<compile_context>
chip_gen: v6e
topology: v6e:2x2x1
jax: 0.10.0
libtpu: 0.0.40
codegen_flags: <defaults>
</compile_context>

<pallas_src>
import functools

import jax
import jax.numpy as jnp
import numpy as np
from jax.experimental import pallas as pl
from jax.experimental.pallas import tpu as pltpu


def _round_up(x, m):
    return (x + m - 1) // m * m


def _conv_bn_tanh_kernel(x_ref, w_ref, prm_ref, o_ref, sum_ref, ssq_ref,
                         *, inv_count, eps):
    """Two-phase kernel over grid (phase, batch, L-tiles).

    x_ref   : (C_in*K, Lt)    im2col'd input tile (batch dim squeezed)
    w_ref   : (C_out, C_in*K) reshaped conv weight
    prm_ref : (C_out, 2)      [gamma, beta]
    o_ref   : (C_out, Lt)     output tile (batch dim squeezed)
    sum_ref : (C_out, 1)      VMEM scratch: running per-channel sum
    ssq_ref : (C_out, 1)      VMEM scratch: running per-channel sum of squares
    """
    phase = pl.program_id(0)
    n = pl.program_id(1)
    j = pl.program_id(2)

    # The whole conv for this tile is ONE MXU matmul (contraction = C_in*K).
    y = jnp.dot(w_ref[...], x_ref[...], preferred_element_type=jnp.float32)

    @pl.when((phase == 0) & (n == 0) & (j == 0))
    def _init():
        sum_ref[...] = jnp.zeros_like(sum_ref)
        ssq_ref[...] = jnp.zeros_like(ssq_ref)

    @pl.when(phase == 0)
    def _accumulate_stats():
        sum_ref[...] += jnp.sum(y, axis=1, keepdims=True)
        ssq_ref[...] += jnp.sum(y * y, axis=1, keepdims=True)

    @pl.when(phase == 1)
    def _normalize_and_store():
        mean = sum_ref[...] * inv_count                   # (C_out, 1)
        var = ssq_ref[...] * inv_count - mean * mean      # biased variance
        gamma = prm_ref[:, 0:1]
        beta = prm_ref[:, 1:2]
        scale = gamma * jax.lax.rsqrt(var + eps)          # (C_out, 1)
        shift = beta - mean * scale
        # fused FMA + tanh, single store per output element
        o_ref[...] = jnp.tanh(y * scale + shift).astype(o_ref.dtype)


def conv_bn_tanh(x, w, b, gamma, beta, *, kernel_size=3, dilation=1,
                 padding=True, eps=1e-5, lane_tile=512):
    """x: (N, C_in, L) float32, PyTorch NCL layout. Returns (N, C_out, L_out)."""
    del b  # conv bias cancels exactly under training-mode BatchNorm
    N, C_in, L = x.shape
    C_out = w.shape[0]
    K = kernel_size
    pad = (K - 1) // 2 if padding else 0
    L_out = L + 2 * pad - dilation * (K - 1)
    CK = C_in * K

    # im2col: stack the K dilated shifted views along the contraction axis
    # (k-major, then c_in) -> (N, C_in*K, L_out).
    x_pad = jnp.pad(x, ((0, 0), (0, 0), (pad, pad)))
    x_col = jnp.concatenate(
        [x_pad[:, :, k * dilation: k * dilation + L_out] for k in range(K)],
        axis=1)
    # weight (C_out, C_in, K) -> (C_out, K*C_in), matching the (k, c_in) order.
    w2 = jnp.transpose(w, (0, 2, 1)).reshape(C_out, CK)

    # Lane-dense tiling of the length axis (multiples of 128).
    Lt = min(lane_tile, _round_up(L_out, 128))
    Lt = _round_up(Lt, 128)
    L_p = _round_up(L_out, Lt)
    if L_p > L_out:
        # Zero columns contribute 0 to both the conv and the stats -> harmless.
        x_col = jnp.pad(x_col, ((0, 0), (0, 0), (0, L_p - L_out)))
    n_tiles = L_p // Lt

    params = jnp.stack([gamma, beta], axis=1).astype(jnp.float32)  # (C_out, 2)
    inv_count = 1.0 / float(N * L_out)   # true per-channel element count

    kernel = functools.partial(_conv_bn_tanh_kernel,
                               inv_count=inv_count, eps=eps)

    grid_spec = pltpu.PrefetchScalarGridSpec(
        num_scalar_prefetch=0,
        grid=(2, N, n_tiles),                      # (phase, batch, L-tiles)
        in_specs=[
            pl.BlockSpec((None, CK, Lt), lambda p, n, j: (n, 0, j)),
            pl.BlockSpec((C_out, CK), lambda p, n, j: (0, 0)),
            pl.BlockSpec((C_out, 2), lambda p, n, j: (0, 0)),
        ],
        # Phase 0 never writes the output; park it on block (0,0,0) so no
        # useless HBM write-back happens until phase 1 produces real data.
        out_specs=pl.BlockSpec((None, C_out, Lt),
                               lambda p, n, j: (p * n, 0, p * j)),
        scratch_shapes=[pltpu.VMEM((C_out, 1), jnp.float32),
                        pltpu.VMEM((C_out, 1), jnp.float32)],
    )

    out = pl.pallas_call(
        kernel,
        out_shape=jax.ShapeDtypeStruct((N, C_out, L_p), jnp.float32),
        grid_spec=grid_spec,
        compiler_params=pltpu.CompilerParams(
            # BN-stats scratch couples phase 0 -> phase 1, so no axis may be
            # sharded across TensorCores ("parallel").
            dimension_semantics=("arbitrary", "arbitrary", "arbitrary")),
    )(x_col, w2, params)

    return out[:, :, :L_out]


def conv_bn_tanh_reference(x, w, b, gamma, beta, *, kernel_size=3, dilation=1,
                           padding=True, eps=1e-5):
    """Pure-JAX reference: Conv1d (with bias) + training-mode BN + Tanh."""
    K = kernel_size
    pad = (K - 1) // 2 if padding else 0
    L = x.shape[-1]
    L_out = L + 2 * pad - dilation * (K - 1)
    x_pad = jnp.pad(x, ((0, 0), (0, 0), (pad, pad)))
    y = sum(
        jnp.einsum('oi,nil->nol', w[:, :, k],
                   x_pad[:, :, k * dilation: k * dilation + L_out],
                   precision=jax.lax.Precision.HIGHEST)
        for k in range(K)
    ) + b[None, :, None]
    mean = jnp.mean(y, axis=(0, 2), keepdims=True)
    var = jnp.mean((y - mean) ** 2, axis=(0, 2), keepdims=True)
    y = (y - mean) * jax.lax.rsqrt(var + eps) * gamma[None, :, None] \
        + beta[None, :, None]
    return jnp.tanh(y)


if __name__ == "__main__":
    # Conv(in_channels=4, out_channels=8), kernel_size=3, dilation=1, padding.
    N, C_in, C_out, L, K = 2, 4, 8, 128, 3

    key = jax.random.PRNGKey(0)
    kx, kw, kb = jax.random.split(key, 3)

    x = jax.random.normal(kx, (N, C_in, L), dtype=jnp.float32)

    # Conv1d default init scale, deterministic.
    bound = 1.0 / np.sqrt(C_in * K)
    w = jax.random.uniform(kw, (C_out, C_in, K), jnp.float32, -bound, bound)
    b = jax.random.uniform(kb, (C_out,), jnp.float32, -bound, bound)

    # BatchNorm1d fresh init: gamma=1, beta=0.
    gamma = jnp.ones((C_out,), jnp.float32)
    beta = jnp.zeros((C_out,), jnp.float32)

    out = conv_bn_tanh(x, w, b, gamma, beta, kernel_size=K)
    out = jax.block_until_ready(out)

    ref = conv_bn_tanh_reference(x, w, b, gamma, beta, kernel_size=K)
    np.testing.assert_allclose(np.asarray(out), np.asarray(ref),
                               rtol=2e-4, atol=2e-5)

    print("KERNEL_OK")
</pallas_src>

<mosaic_0001>
module attributes {stable_mosaic.version = 11 : i64} {
  func.func @_conv_bn_tanh_kernel(%arg0: i32, %arg1: i32, %arg2: i32, %arg3: memref<1x12x128xf32, #tpu.memory_space<vmem>>, %arg4: memref<8x12xf32, #tpu.memory_space<vmem>>, %arg5: memref<8x2xf32, #tpu.memory_space<vmem>>, %arg6: memref<1x8x128xf32, #tpu.memory_space<vmem>>, %arg7: memref<8x1xf32, #tpu.memory_space<vmem>>, %arg8: memref<8x1xf32, #tpu.memory_space<vmem>>) attributes {dimension_semantics = [#tpu.dimension_semantics<arbitrary>, #tpu.dimension_semantics<arbitrary>, #tpu.dimension_semantics<arbitrary>], iteration_bounds = array<i64: 2, 2, 1>, scalar_prefetch = 0 : i64, scratch_operands = 2 : i64, tpu.core_type = #tpu.core_type<tc>, window_params = [{transform_indices = @transform_0, window_bounds = array<i64: 1, 12, 128>}, {pipeline_mode = #tpu.pipeline_mode<synchronous>, transform_indices = @transform_1, window_bounds = array<i64: 8, 12>}, {pipeline_mode = #tpu.pipeline_mode<synchronous>, transform_indices = @transform_2, window_bounds = array<i64: 8, 2>}, {transform_indices = @transform_3, window_bounds = array<i64: 1, 8, 128>}]} {
    %c0 = arith.constant 0 : index
    %c0_0 = arith.constant 0 : index
    %0 = vector.load %arg4[%c0, %c0_0] : memref<8x12xf32, #tpu.memory_space<vmem>>, vector<8x12xf32>
    %c0_1 = arith.constant 0 : index
    %c0_2 = arith.constant 0 : index
    %c0_3 = arith.constant 0 : index
    %1 = vector.load %arg3[%c0_1, %c0_2, %c0_3] : memref<1x12x128xf32, #tpu.memory_space<vmem>>, vector<1x12x128xf32>
    %2 = vector.shape_cast %1 : vector<1x12x128xf32> to vector<12x128xf32>
    %cst = arith.constant dense<0.000000e+00> : vector<8x128xf32>
    %3 = tpu.matmul %0, %2, %cst {dimension_numbers = #tpu.dot_dimension_numbers<[1], [0], [0], [1], [0, 0, 1, 1], [], []>} : vector<8x12xf32>, vector<12x128xf32>, vector<8x128xf32> -> vector<8x128xf32>
    %c0_i32 = arith.constant 0 : i32
    %4 = arith.cmpi eq, %arg0, %c0_i32 : i32
    %c0_i32_4 = arith.constant 0 : i32
    %5 = arith.cmpi eq, %arg1, %c0_i32_4 : i32
    %6 = arith.andi %4, %5 : i1
    %c0_i32_5 = arith.constant 0 : i32
    %7 = arith.cmpi eq, %arg2, %c0_i32_5 : i32
    %8 = arith.andi %6, %7 : i1
    %9 = arith.extui %8 : i1 to i32
    %c0_i32_6 = arith.constant 0 : i32
    %10 = arith.cmpi ne, %9, %c0_i32_6 : i32
    scf.if %10 {
      %cst_10 = arith.constant 0.000000e+00 : f32
      %17 = vector.broadcast %cst_10 : f32 to vector<8x1xf32>
      %c0_11 = arith.constant 0 : index
      %c0_12 = arith.constant 0 : index
      %18 = vector.load %arg7[%c0_11, %c0_12] : memref<8x1xf32, #tpu.memory_space<vmem>>, vector<8x1xf32>
      tpu.vector_store %arg7[%c0_11, %c0_12], %17 {strides = array<i32>} : memref<8x1xf32, #tpu.memory_space<vmem>>, vector<8x1xf32>,
      %cst_13 = arith.constant 0.000000e+00 : f32
      %19 = vector.broadcast %cst_13 : f32 to vector<8x1xf32>
      %c0_14 = arith.constant 0 : index
      %c0_15 = arith.constant 0 : index
      %20 = vector.load %arg8[%c0_14, %c0_15] : memref<8x1xf32, #tpu.memory_space<vmem>>, vector<8x1xf32>
      tpu.vector_store %arg8[%c0_14, %c0_15], %19 {strides = array<i32>} : memref<8x1xf32, #tpu.memory_space<vmem>>, vector<8x1xf32>,
    } else {
    }
    %c0_i32_7 = arith.constant 0 : i32
    %11 = arith.cmpi eq, %arg0, %c0_i32_7 : i32
    %12 = arith.extui %11 : i1 to i32
    %c0_i32_8 = arith.constant 0 : i32
    %13 = arith.cmpi ne, %12, %c0_i32_8 : i32
    scf.if %13 {
      %c0_10 = arith.constant 0 : index
      %c0_11 = arith.constant 0 : index
      %17 = vector.load %arg7[%c0_10, %c0_11] : memref<8x1xf32, #tpu.memory_space<vmem>>, vector<8x1xf32>
      %cst_12 = arith.constant dense<0.000000e+00> : vector<8xf32>
      %18 = vector.multi_reduction <add>, %3, %cst_12 [1] : vector<8x128xf32> to vector<8xf32>
      %19 = vector.shape_cast %18 : vector<8xf32> to vector<8x1xf32>
      %20 = arith.addf %17, %19 : vector<8x1xf32>
      %c0_13 = arith.constant 0 : index
      %c0_14 = arith.constant 0 : index
      %21 = vector.load %arg7[%c0_13, %c0_14] : memref<8x1xf32, #tpu.memory_space<vmem>>, vector<8x1xf32>
      tpu.vector_store %arg7[%c0_13, %c0_14], %20 {strides = array<i32>} : memref<8x1xf32, #tpu.memory_space<vmem>>, vector<8x1xf32>,
      %c0_15 = arith.constant 0 : index
      %c0_16 = arith.constant 0 : index
      %22 = vector.load %arg8[%c0_15, %c0_16] : memref<8x1xf32, #tpu.memory_space<vmem>>, vector<8x1xf32>
      %23 = arith.mulf %3, %3 : vector<8x128xf32>
      %cst_17 = arith.constant dense<0.000000e+00> : vector<8xf32>
      %24 = vector.multi_reduction <add>, %23, %cst_17 [1] : vector<8x128xf32> to vector<8xf32>
      %25 = vector.shape_cast %24 : vector<8xf32> to vector<8x1xf32>
      %26 = arith.addf %22, %25 : vector<8x1xf32>
      %c0_18 = arith.constant 0 : index
      %c0_19 = arith.constant 0 : index
      %27 = vector.load %arg8[%c0_18, %c0_19] : memref<8x1xf32, #tpu.memory_space<vmem>>, vector<8x1xf32>
      tpu.vector_store %arg8[%c0_18, %c0_19], %26 {strides = array<i32>} : memref<8x1xf32, #tpu.memory_space<vmem>>, vector<8x1xf32>,
    } else {
    }
    %c1_i32 = arith.constant 1 : i32
    %14 = arith.cmpi eq, %arg0, %c1_i32 : i32
    %15 = arith.extui %14 : i1 to i32
    %c0_i32_9 = arith.constant 0 : i32
    %16 = arith.cmpi ne, %15, %c0_i32_9 : i32
    scf.if %16 {
      %c0_10 = arith.constant 0 : index
      %c0_11 = arith.constant 0 : index
      %17 = vector.load %arg7[%c0_10, %c0_11] : memref<8x1xf32, #tpu.memory_space<vmem>>, vector<8x1xf32>
      %cst_12 = arith.constant 3.906250e-03 : f32
      %18 = vector.broadcast %cst_12 : f32 to vector<8x1xf32>
      %19 = arith.mulf %17, %18 : vector<8x1xf32>
      %c0_13 = arith.constant 0 : index
      %c0_14 = arith.constant 0 : index
      %20 = vector.load %arg8[%c0_13, %c0_14] : memref<8x1xf32, #tpu.memory_space<vmem>>, vector<8x1xf32>
      %cst_15 = arith.constant 3.906250e-03 : f32
      %21 = vector.broadcast %cst_15 : f32 to vector<8x1xf32>
      %22 = arith.mulf %20, %21 : vector<8x1xf32>
      %23 = arith.mulf %19, %19 : vector<8x1xf32>
      %24 = arith.subf %22, %23 : vector<8x1xf32>
      %c0_16 = arith.constant 0 : index
      %c0_17 = arith.constant 0 : index
      %25 = vector.load %arg5[%c0_16, %c0_17] : memref<8x2xf32, #tpu.memory_space<vmem>>, vector<8x1xf32>
      %c0_18 = arith.constant 0 : index
      %c1 = arith.constant 1 : index
      %26 = vector.load %arg5[%c0_18, %c1] : memref<8x2xf32, #tpu.memory_space<vmem>>, vector<8x1xf32>
      %cst_19 = arith.constant 9.99999974E-6 : f32
      %27 = vector.broadcast %cst_19 : f32 to vector<8x1xf32>
      %28 = arith.addf %24, %27 : vector<8x1xf32>
      %29 = math.rsqrt %28 : vector<8x1xf32>
      %30 = arith.mulf %25, %29 : vector<8x1xf32>
      %31 = arith.mulf %19, %30 : vector<8x1xf32>
      %32 = arith.subf %26, %31 : vector<8x1xf32>
      %33 = vector.broadcast %30 : vector<8x1xf32> to vector<8x128xf32>
      %34 = arith.mulf %3, %33 : vector<8x128xf32>
      %35 = vector.broadcast %32 : vector<8x1xf32> to vector<8x128xf32>
      %36 = arith.addf %34, %35 : vector<8x128xf32>
      %37 = math.tanh %36 : vector<8x128xf32>
      %c0_20 = arith.constant 0 : index
      %c0_21 = arith.constant 0 : index
      %c0_22 = arith.constant 0 : index
      %38 = vector.load %arg6[%c0_20, %c0_21, %c0_22] : memref<1x8x128xf32, #tpu.memory_space<vmem>>, vector<1x8x128xf32>
      %39 = vector.shape_cast %38 : vector<1x8x128xf32> to vector<8x128xf32>
      %40 = vector.shape_cast %37 : vector<8x128xf32> to vector<1x8x128xf32>
      tpu.vector_store %arg6[%c0_20, %c0_21, %c0_22], %40 {strides = array<i32>} : memref<1x8x128xf32, #tpu.memory_space<vmem>>, vector<1x8x128xf32>,
    } else {
    }
    return
  }
  func.func @transform_0(%arg0: i32, %arg1: i32, %arg2: i32) -> (i32, i32, i32) {
    %c0_i32 = arith.constant 0 : i32
    %c0_i32_0 = arith.constant 0 : i32
    return %arg1, %c0_i32, %arg2 : i32, i32, i32
  }
  func.func @transform_1(%arg0: i32, %arg1: i32, %arg2: i32) -> (i32, i32) {
    %c0_i32 = arith.constant 0 : i32
    %c0_i32_0 = arith.constant 0 : i32
    %c0_i32_1 = arith.constant 0 : i32
    return %c0_i32, %c0_i32_0 : i32, i32
  }
  func.func @transform_2(%arg0: i32, %arg1: i32, %arg2: i32) -> (i32, i32) {
    %c0_i32 = arith.constant 0 : i32
    %c0_i32_0 = arith.constant 0 : i32
    %c0_i32_1 = arith.constant 0 : i32
    return %c0_i32, %c0_i32_0 : i32, i32
  }
  func.func @transform_3(%arg0: i32, %arg1: i32, %arg2: i32) -> (i32, i32, i32) {
    %0 = arith.muli %arg0, %arg1 : i32
    %1 = arith.muli %arg0, %arg2 : i32
    %c0_i32 = arith.constant 0 : i32
    %c0_i32_0 = arith.constant 0 : i32
    return %0, %c0_i32, %1 : i32, i32, i32
  }
}

</mosaic_0001>

<bundles_post_ra>
// kernel: tpu_custom_call.1
= control target key start
LH: loop header
LB: loop body
LE: loop exit
PB: predicated region body
PF: predicated region fallthrough
CT: control target
= control target key end

     0   :  { %8 = vsyncpa [#allocation5], 0  ;;  %s822_s0 = inlined_call_operand.vmem [shape: f32[2,12,128], index: 0, kind: input, shape index: {}]   ;;  %s823_s1 = inlined_call_operand.vmem [shape: f32[8,12], index: 1, kind: input, shape index: {}]   ;;  %s824_s2 = inlined_call_operand.vmem [shape: f32[8,2], index: 2, kind: input, shape index: {}]   ;;  %s825_s3 = inlined_call_operand.hbm [shape: f32[2,8,128], index: 3, kind: output, shape index: {}]  }
   0x1   :  { %10 = vsyncpa [#allocation5 + $0x1], 0  ;;  %s679_s12 = smov 0   ;;  %s681_s13 = smov 0  }
   0x2   :  { %s683_s14 = smov 0   ;;  %s685_s15 = smov 0  }
   0x3   :  { %s687_s16 = smov 0   ;;  %s689_s17 = smov 0  }
   0x4   :  { %s691_s18 = smov 0   ;;  %s693_s19 = smov 0  }
   0x5 LB: > { %s446_s20 = sadd.s32 4294967295, %s650_s19   ;;  %s447_s21 = sadd.s32 4294967294, %s650_s19   ;;  %s650_s19 = sphi %s693_s19, %s16_s19   ;;  %s646_s18 = sphi %s691_s18, %s834_s18   ;;  %s642_s17 = sphi %s689_s17, %s833_s17   ;;  %s638_s16 = sphi %s687_s16, %s832_s16   ;;  %s634_s15 = sphi %s685_s15, %s831_s15   ;;  %s630_s14 = sphi %s683_s14, %s830_s14   ;;  %s626_s13 = sphi %s681_s13, %s829_s13   ;;  %s622_s12 = sphi %s679_s12, %s828_s12  }
   0x6   : > { %s31_s22 = sadd.s32 1, %s642_s17  ;;  %s35_s23 = sadd.s32 1, %s646_s18 }
   0x7   : > { %p33_p0 = scmp.ge.s32.totalorder %s31_s22, 2  ;;  %s109_s24 = smul.u32 %s642_s17, %s646_s18 }
   0x8   : > { %p128_p1 = scmp.ne.s32.totalorder %s630_s14, %s626_s13  ;;  %p129_p2 = scmp.eq.s32.totalorder %s446_s20, 3 }
   0x9   : > { %s836_s22 = smov (%p33_p0, %s31_s22), 0  ;;  %s838_s23 = smov (!%p33_p0, %s35_s23), %s646_s18 }
   0xa   : > { %p134_p3 = scmp.ne.s32.totalorder %s626_s13, %s622_s12  ;;  %p37_p4 = scmp.ge.s32.totalorder %s838_s23, 2 }
   0xb   : > { %p135_p5 = scmp.eq.s32.totalorder %s447_s21, 3  ;;  %p732_p6 = por %p129_p2, %p128_p1 }
   0xc   : > { %p450_p7 = scmp.ge.s32.totalorder %s650_s19, 1  ;;  %s840_s23 = smov (%p37_p4, %s838_s23), 0 }
   0xd   : > { %p739_p8 = por %p135_p5, %p134_p3  ;;  %p170_p9 = scmp.lt.s32.totalorder %s650_s19, 5 }
   0xe   : > { %s111_s27 = smul.u32 %s840_s23, %s836_s22  ;;  %s118_s29 = sadd.s32 1, %s630_s14 }
   0xf   : > { %p171_p10 = pnand %p450_p7, %p170_p9 }
  0x10   : > { %s113_s28 = ssub.s32 %s109_s24, %s111_s27  ;;  %s194_s4 = sand.u32 (!%p171_p10), 1, %s626_s13  }
  0x11   : > { %p116_p11 = scmp.eq.s32.totalorder %s113_s28, 0  ;;  %174 = sbr.rel (%p171_p10) target bundleno = 695 (0x2b7), region = 32 }
  0x12   : > { %p197_p12 = scmp.lt.s32.totalorder (!%p171_p10), %s634_s15, 1  ;;  %s754_s5 = sshll.u32 (!%p171_p10), %s194_s4, 3 }
  0x13   : > { %s748_s30 = scalar_select %p116_p11, %s630_s14, %s118_s29  }
  0x14   : > { %p288_p13 = scmp.eq.s32.totalorder (!%p171_p10), %s638_s16, 0  ;;  %p289_p0 = scmp.eq.s32.totalorder (!%p171_p10), %s634_s15, 0 }
  0x15   : > { %s196_s21 = scalar_lea.vmem (!%p171_p10), [#allocation4], %s754_s5 }
  0x16   : > { %v652_v0 = vmov 0.0   ;;  %vm653_vm0 = vmmov 0   ;;  %s198_s6 = scalar_select %p197_p12, %s634_s15, 1  ;;  %vm214_vm1 = vcmask 1043456   ;;  %v207_v3 = vld [vmem:[%s823_s1] sm:$0xff]  ;;  %vm210_vm2 = vcmask 97280  }
  0x17   : > { %467 = vmatprep.subr.mxu0 %v652_v0  ;;  %471 = vmatprep.mubr.msk.f32.mxu0 %vm653_vm0, %v652_v0  ;;  %p290_p1 = pnand %p289_p0, %p288_p13 }
  0x18   : > { %s463_s7 = sshll.u32 %s198_s6, 4 }
  0x19   : > { %s204_s10 = scalar_lea.vmem %s822_s0, %s463_s7 }
  0x1a   : > { %v209_v1 = vld [vmem:[%s204_s10 + $0x8] sm:$0xf]  ;;  %v208_v2 = vld [vmem:[%s204_s10] sm:$0xff] }
  0x1b   : > { %468 = vmatpush3.msk.msra.mxu0 %vm214_vm1, %v209_v1 }
  0x1c   : > { %469 = vmatprep.subr.mxu0 %v652_v0 }
  0x1d   : > { %470 = vmatpush3.msra.mxu0 %v208_v2 }
  0x1e   : > { %472 = vmatmul.mubr.msk.f32.vlgmr.msra.gmra.mxu0 %vm210_vm2, %v207_v3 }
  0xdc   : > { %296 = sbr.rel (%p290_p1) target bundleno = 227 (0xe3), region = 36 }
  0xde   : > { %v284_v4 = vpop.f32.mrf.mxu0 }
  0xe0   : > { %v473_v5 = vpop.f32.mrf.mxu0 }
  0xe1   : > { %vm297_vm3 = vcmask 7168   ;;  %v654_v6 = vmov 0.0  }
  0xe2   : > { %298 = vst.msk [vmem:[#allocation2] sm:$0xff] %vm297_vm3, %v654_v6  ;;  %299 = vst.msk [vmem:[#allocation3] sm:$0xff] %vm297_vm3, %v654_v6 }
  0xe3 PF: > { %p457_p2 = scmp.ne.s32.totalorder %s638_s16, 0 }
  0xe5   : > { %302 = sbr.rel (%p457_p2) target bundleno = 379 (0x17b), region = 40 }
  0xea   : > { %304 = vadd.xlane.f32.xlu0 %v284_v4  ;;  %v310_v7 = vmul.f32 %v284_v4, %v284_v4  ;;  %v303_v8 = vld [vmem:[#allocation2] sm:$0xff]  ;;  %vm307_vm4 = vcmask 7168   ;;  %v309_v11 = vld [vmem:[#allocation3] sm:$0xff] }
  0xee   : > { %311 = vadd.xlane.f32.xlu0 %v310_v7 }
 0x173   : > { %v305_v9 = vpop.xlane.xlu0 %304 }
 0x174   : > { %v306_v10 = vadd.f32 %v305_v9, %v303_v8 }
 0x176   : > { %308 = vst.msk [vmem:[#allocation2] sm:$0xff] %vm307_vm4, %v306_v10 }
 0x177   : > { %v312_v12 = vpop.xlane.xlu0 %311 }
 0x178   : > { %v313_v13 = vadd.f32 %v312_v12, %v309_v11 }
 0x17a   : > { %314 = vst.msk [vmem:[#allocation3] sm:$0xff] %vm307_vm4, %v313_v13 }
 0x17b PF: > { %p458_p3 = scmp.ne.s32.totalorder %s638_s16, 1 }
 0x17c   : > { %s657_s28 = smov (!%p458_p3), 1  }
 0x17d   : > { %318 = sbr.rel (%p458_p3) target bundleno = 671 (0x29f), region = 44 }
 0x182   : > { %v319_v14 = vld [vmem:[#allocation2] sm:$0xff]  ;;  %v321_v15 = vld [vmem:[#allocation3] sm:$0xff]  ;;  %v655_v18 = vmov 0   ;;  %v656_v22 = vmov 1  }
 0x183   : > { %v320_v16 = vmul.f32 0.00390625, %v319_v14  ;;  %v322_v17 = vmul.f32 0.00390625, %v321_v15  ;;  %551 = vset.pattern.permute.xlu0 %v655_v18  ;;  %552 = vset.pattern.permute.xlu1 %v656_v22  ;;  %v325_v23 = vld [vmem:[%s824_s2] sm:$0xff] }
 0x185   : > { %v323_v19 = vmul.f32 %v320_v16, %v320_v16 }
 0x187   : > { %v324_v20 = vsub.f32 %v322_v17, %v323_v19 }
 0x189   : > { %v326_v21 = vadd.f32 1e-05, %v324_v20 }
 0x18b   : > { %554 = vrsqrt.f32 %v326_v21 }
 0x198   : > { %v555_v24 = vpop.eup %554 }
 0x199   : > { %v328_v25 = vmul.f32 %v555_v24, %v325_v23 }
 0x19b   : > { %v329_v26 = vmul.f32 %v328_v25, %v320_v16 }
 0x19d   : > { %331 = vrot.lane.b32.xlu0 %v329_v26, %s657_s28 }
 0x1a1   : > { %337 = vperm.xlu0 %551, %v328_v25  }
 0x1a5   : > { %553 = vset.pattern.permute.xlu0 %v656_v22 }
 0x20f   : > { %v332_v27 = vpop.permute.xlu0 %331 }
 0x210   : > { %v334_v28 = vsub.f32 %v325_v23, %v332_v27 }
 0x212   : > { %343 = vperm.xlu1 %552, %v334_v28  }
 0x21c   : > { %v338_v29 = vpop.permute.xlu0 %337 }
 0x21d   : > { %v340_v30 = vmul.f32 %v338_v29, %v284_v4 }
 0x28d   : > { %v344_v31 = vpop.permute.xlu1 %343 }
 0x28e   : > { %v346_v32 = vadd.f32 %v344_v31, %v340_v30 }
 0x290   : > { %556 = vtanh.f32 %v346_v32 }
 0x29d   : > { %v557_v33 = vpop.eup %556 }
 0x29e   : > { %348 = vst [vmem:[%s196_s21] sm:$0xff] %v557_v33 }
 0x29f PF: > { %s357_s29 = smul.u32 %s634_s15, %s638_s16  ;;  %s366_s6 = sshll.u32 %s196_s21, 4  ;;  %s367_s6 = int_to_ptr.vmem [resolvable:$true] %s366_s6 }
 0x2a0   : > { %s350_s11 = scalar_lea.sflag [#allocation5], %s194_s4  ;;  %s558_s20 = scalar_lea.vmem %s367_s6, 128 }
 0x2a1   : > { %s460_s7 = sshll.u32 %s357_s29, 7  ;;  %p559_p4 = scmp.ne.s32.totalorder %s367_s6, %s558_s20 }
 0x2a2   : > { %s364_s10 = scalar_lea.hbm %s825_s3, %s460_s7  ;;  %s658_s24 = smov [#allocation4]  }
 0x2a3   : > { %p560_p5 = pnand %p559_p4, %p732_p6  ;;  %s562_s27 = sshll.u32 %s658_s24, 4  ;;  %s563_s27 = int_to_ptr.vmem [resolvable:$false] %s562_s27 }
 0x2a4   : > { %s564_s28 = scalar_lea.vmem %s563_s27, 256  ;;  %p565_p9 = scmp.lt.s32.totalorder %s367_s6, %s563_s27 }
 0x2a5   : > { %p561_p7 = pneg %p560_p5  ;;  %p566_p10 = scmp.lt.s32.totalorder %s564_s28, %s558_s20 }
 0x2a7   : > { %p567_p11 = por %p566_p10, %p565_p9 }
 0x2a9   : > { %p568_p12 = pnand %p567_p11, %p561_p7 }
 0x2ab   : > { %571 = shalt.err (!%p568_p12)
}
 0x2ac   : > { %s572_s15 = scalar_lea.hbm %s364_s10, 128  ;;  %s576_s5 = scalar_lea.hbm %s825_s3, 256 }
 0x2ad   : > { %p573_p13 = scmp.ne.s32.totalorder %s364_s10, %s572_s15  ;;  %p577_p2 = scmp.lt.s32.totalorder %s364_s10, %s825_s3 }
 0x2ae   : > { %p578_p3 = scmp.lt.s32.totalorder %s576_s5, %s572_s15 }
 0x2af   : > { %p574_p0 = pnand %p573_p13, %p732_p6 }
 0x2b0   : > { %p579_p4 = por %p578_p3, %p577_p2 }
 0x2b1   : > { %p575_p1 = pneg %p574_p0 }
 0x2b3   : > { %p580_p5 = pnand %p579_p4, %p575_p1 }
 0x2b5   : > { %583 = shalt.err (!%p580_p5)
}
 0x2b6   : > { %474 = dma.vmem_to_hbm [thread:$0]  (%p732_p6), %s367_s6, 128, %s364_s10, %s350_s11  }
 0x2b7 PF: > { %p480_p7 = scmp.ge.s32.totalorder %s650_s19, 2  ;;  %s378_s7 = sand.u32 1, %s622_s12  }
 0x2b8   : > { %s379_s8 = scalar_lea.sflag [#allocation5], %s378_s7 }
 0x2b9   : > { %p477_p9 = pnand %p480_p7, %p739_p8 }
 0x2bb   : > { %p478_p10 = pneg %p477_p9 }
 0x2bd   : > { %617 = dma.done.wait (%p478_p10), %s379_s8, 128  }
 0x2be   : > { %619 = vsyncadd (%p478_p10), %s379_s8, 4294967168  ;;  %s16_s19 = sadd.s32 1, %s650_s19   ;;  %s828_s12 = smov %s626_s13 }
 0x2bf   : > { %p13_p11 = scmp.ge.s32.totalorder %s16_s19, 6   ;;  %s829_s13 = smov %s630_s14 }
 0x2c0   : > { %s830_s14 = smov %s748_s30  ;;  %s831_s15 = smov %s642_s17 }
 0x2c1   : > { %s832_s16 = smov %s646_s18  ;;  %s833_s17 = smov %s836_s22 }
 0x2c2   : > { %s834_s18 = smov %s840_s23  ;;  %15 = sbr.rel (!%p13_p11) target bundleno = 5 (0x5), region = 79 }
 0x2c7   :  { %384 = vsyncpa [#allocation5], 1 }
 0x2c8   :  { %386 = vsyncpa [#allocation5 + $0x1], 1 }

</bundles_post_ra>
